<compile_context>
chip_gen: v7x
topology: tpu7x:2x2x1
jax: 0.10.0
libtpu: 0.0.40
codegen_flags: <defaults>
</compile_context>

<pallas_src>
import functools

import jax
import jax.numpy as jnp
from jax.experimental import pallas as pl
from jax.experimental.pallas import tpu as pltpu


def _round_up(n: int, m: int) -> int:
    return (n + m - 1) // m * m


def linear_combine_kernel(x_ref, y_ref, wx_ref, wy_ref, b_ref, o_ref):
    # Fused concat: out = x @ Wx + y @ Wy + b   (activation = Identity)
    acc = jnp.dot(x_ref[...], wx_ref[...], preferred_element_type=jnp.float32)
    acc = acc + jnp.dot(y_ref[...], wy_ref[...], preferred_element_type=jnp.float32)
    o_ref[...] = (acc + b_ref[...]).astype(o_ref.dtype)


@functools.partial(jax.jit, static_argnames=("tile_b", "tile_n", "compute_dtype"))
def linear_combine(x, y, w, b, *, tile_b=None, tile_n=None,
                   compute_dtype=jnp.bfloat16):
    """LinearCombine forward.

    x: (B, Dx), y: (B, Dy)
    w: (Dout, Din) torch nn.Linear layout with Din = Dx + Dy
    b: (Dout,)
    Returns (B, Dout) in x.dtype.
    """
    B, Dx = x.shape
    _, Dy = y.shape
    Dout, Din = w.shape
    assert Din == Dx + Dy, "weight in-features must equal Dx + Dy"
    out_dtype = x.dtype

    # --- split + transpose the weight so the kernel does plain (B,K)@(K,N) ---
    wx_t = w[:, :Dx].T          # (Dx, Dout)
    wy_t = w[:, Dx:].T          # (Dy, Dout)

    # --- lane-dense output: pad Dout to a multiple of 128, pick tile_n ------
    if tile_n is None:
        tile_n = min(512, _round_up(Dout, 128))
    tile_n = _round_up(tile_n, 128)
    Dout_pad = _round_up(Dout, tile_n)
    if Dout_pad != Dout:
        pad_n = Dout_pad - Dout
        wx_t = jnp.pad(wx_t, ((0, 0), (0, pad_n)))
        wy_t = jnp.pad(wy_t, ((0, 0), (0, pad_n)))
        b = jnp.pad(b, ((0, pad_n),))
    b2 = b.reshape(1, Dout_pad).astype(jnp.float32)

    # --- batch tiling: multiple of 8, target 512 rows, >=2 programs if B>=16 -
    if tile_b is None:
        b8 = _round_up(B, 8)
        tile_b = min(512, b8)
        if b8 // tile_b < 2 and b8 >= 16:   # let megacore/pipelining kick in
            tile_b = _round_up(b8 // 2, 8)
    B_pad = _round_up(B, tile_b)
    if B_pad != B:
        pad_b = B_pad - B
        x = jnp.pad(x, ((0, pad_b), (0, 0)))
        y = jnp.pad(y, ((0, pad_b), (0, 0)))

    # --- bf16 activations/weights, f32 accumulation inside the kernel -------
    xc = x.astype(compute_dtype)
    yc = y.astype(compute_dtype)
    wxc = wx_t.astype(compute_dtype)
    wyc = wy_t.astype(compute_dtype)

    grid = (B_pad // tile_b, Dout_pad // tile_n)

    out = pl.pallas_call(
        linear_combine_kernel,
        out_shape=jax.ShapeDtypeStruct((B_pad, Dout_pad), out_dtype),
        grid_spec=pltpu.PrefetchScalarGridSpec(
            num_scalar_prefetch=0,
            grid=grid,
            in_specs=[
                pl.BlockSpec((tile_b, Dx), lambda i, j: (i, 0)),
                pl.BlockSpec((tile_b, Dy), lambda i, j: (i, 0)),
                pl.BlockSpec((Dx, tile_n), lambda i, j: (0, j)),
                pl.BlockSpec((Dy, tile_n), lambda i, j: (0, j)),
                pl.BlockSpec((1, tile_n), lambda i, j: (0, j)),
            ],
            out_specs=pl.BlockSpec((tile_b, tile_n), lambda i, j: (i, j)),
        ),
        compiler_params=pltpu.CompilerParams(
            dimension_semantics=("parallel", "parallel"),
        ),
    )(xc, yc, wxc, wyc, b2)

    return out[:B, :Dout]


if __name__ == "__main__":
    # Small shapes consistent with the module:
    #   input_shape = (Din,) = (Dx + Dy,), output_shape = (Dout,)
    B, Dx, Dy, Dout = 8, 16, 16, 32
    Din = Dx + Dy

    key = jax.random.PRNGKey(0)
    kx, ky, kw, kb = jax.random.split(key, 4)

    x = jax.random.normal(kx, (B, Dx), dtype=jnp.float32)
    y = jax.random.normal(ky, (B, Dy), dtype=jnp.float32)

    # Deterministic parameter init mimicking nn.Linear's U(-1/sqrt(Din), 1/sqrt(Din)).
    bound = 1.0 / jnp.sqrt(jnp.float32(Din))
    w = jax.random.uniform(kw, (Dout, Din), jnp.float32, -bound, bound)  # torch layout
    bias = jax.random.uniform(kb, (Dout,), jnp.float32, -bound, bound)

    out = linear_combine(x, y, w, bias)
    out = jax.block_until_ready(out)
    assert out.shape == (B, Dout)
    assert out.dtype == x.dtype

    # Reference 1: exact semantics in f32 (loose tolerance for the bf16 cast).
    ref_f32 = jnp.concatenate([x, y], axis=1) @ w.T + bias
    assert jnp.allclose(out, ref_f32, atol=5e-2, rtol=5e-2)

    # Reference 2: bf16-matched inputs with f32 accumulation (tight tolerance).
    xb = x.astype(jnp.bfloat16).astype(jnp.float32)
    yb = y.astype(jnp.bfloat16).astype(jnp.float32)
    wb = w.astype(jnp.bfloat16).astype(jnp.float32)
    ref_bf16 = jnp.concatenate([xb, yb], axis=1) @ wb.T + bias
    assert jnp.allclose(out, ref_bf16, atol=1e-4, rtol=1e-4)

    print("KERNEL_OK")
</pallas_src>

<mosaic_0001>
module attributes {stable_mosaic.version = 11 : i64} {
  func.func @linear_combine_kernel(%arg0: i32, %arg1: i32, %arg2: memref<8x16xbf16, #tpu.memory_space<vmem>>, %arg3: memref<8x16xbf16, #tpu.memory_space<vmem>>, %arg4: memref<16x128xbf16, #tpu.memory_space<vmem>>, %arg5: memref<16x128xbf16, #tpu.memory_space<vmem>>, %arg6: memref<1x128xf32, #tpu.memory_space<vmem>>, %arg7: memref<8x128xf32, #tpu.memory_space<vmem>>) attributes {dimension_semantics = [#tpu.dimension_semantics<parallel>, #tpu.dimension_semantics<parallel>], iteration_bounds = array<i64: 1, 1>, scalar_prefetch = 0 : i64, scratch_operands = 0 : i64, tpu.core_type = #tpu.core_type<tc>, window_params = [{transform_indices = @transform_0, window_bounds = array<i64: 8, 16>}, {transform_indices = @transform_1, window_bounds = array<i64: 8, 16>}, {transform_indices = @transform_2, window_bounds = array<i64: 16, 128>}, {transform_indices = @transform_3, window_bounds = array<i64: 16, 128>}, {transform_indices = @transform_4, window_bounds = array<i64: 1, 128>}, {transform_indices = @transform_5, window_bounds = array<i64: 8, 128>}]} {
    %c0 = arith.constant 0 : index
    %c0_0 = arith.constant 0 : index
    %0 = vector.load %arg2[%c0, %c0_0] : memref<8x16xbf16, #tpu.memory_space<vmem>>, vector<8x16xbf16>
    %c0_1 = arith.constant 0 : index
    %c0_2 = arith.constant 0 : index
    %1 = vector.load %arg4[%c0_1, %c0_2] : memref<16x128xbf16, #tpu.memory_space<vmem>>, vector<16x128xbf16>
    %cst = arith.constant dense<0.000000e+00> : vector<8x128xf32>
    %2 = tpu.matmul %0, %1, %cst {dimension_numbers = #tpu.dot_dimension_numbers<[1], [0], [0], [1], [0, 0, 1, 1], [], []>} : vector<8x16xbf16>, vector<16x128xbf16>, vector<8x128xf32> -> vector<8x128xf32>
    %c0_3 = arith.constant 0 : index
    %c0_4 = arith.constant 0 : index
    %3 = vector.load %arg3[%c0_3, %c0_4] : memref<8x16xbf16, #tpu.memory_space<vmem>>, vector<8x16xbf16>
    %c0_5 = arith.constant 0 : index
    %c0_6 = arith.constant 0 : index
    %4 = vector.load %arg5[%c0_5, %c0_6] : memref<16x128xbf16, #tpu.memory_space<vmem>>, vector<16x128xbf16>
    %cst_7 = arith.constant dense<0.000000e+00> : vector<8x128xf32>
    %5 = tpu.matmul %3, %4, %cst_7 {dimension_numbers = #tpu.dot_dimension_numbers<[1], [0], [0], [1], [0, 0, 1, 1], [], []>} : vector<8x16xbf16>, vector<16x128xbf16>, vector<8x128xf32> -> vector<8x128xf32>
    %6 = arith.addf %2, %5 : vector<8x128xf32>
    %c0_8 = arith.constant 0 : index
    %c0_9 = arith.constant 0 : index
    %7 = vector.load %arg6[%c0_8, %c0_9] : memref<1x128xf32, #tpu.memory_space<vmem>>, vector<1x128xf32>
    %8 = vector.broadcast %7 : vector<1x128xf32> to vector<8x128xf32>
    %9 = arith.addf %6, %8 : vector<8x128xf32>
    %c0_10 = arith.constant 0 : index
    %c0_11 = arith.constant 0 : index
    %10 = vector.load %arg7[%c0_10, %c0_11] : memref<8x128xf32, #tpu.memory_space<vmem>>, vector<8x128xf32>
    tpu.vector_store %arg7[%c0_10, %c0_11], %9 {strides = array<i32>} : memref<8x128xf32, #tpu.memory_space<vmem>>, vector<8x128xf32>,
    return
  }
  func.func @transform_0(%arg0: i32, %arg1: i32) -> (i32, i32) {
    %c0_i32 = arith.constant 0 : i32
    %c0_i32_0 = arith.constant 0 : i32
    return %arg0, %c0_i32 : i32, i32
  }
  func.func @transform_1(%arg0: i32, %arg1: i32) -> (i32, i32) {
    %c0_i32 = arith.constant 0 : i32
    %c0_i32_0 = arith.constant 0 : i32
    return %arg0, %c0_i32 : i32, i32
  }
  func.func @transform_2(%arg0: i32, %arg1: i32) -> (i32, i32) {
    %c0_i32 = arith.constant 0 : i32
    %c0_i32_0 = arith.constant 0 : i32
    return %c0_i32, %arg1 : i32, i32
  }
  func.func @transform_3(%arg0: i32, %arg1: i32) -> (i32, i32) {
    %c0_i32 = arith.constant 0 : i32
    %c0_i32_0 = arith.constant 0 : i32
    return %c0_i32, %arg1 : i32, i32
  }
  func.func @transform_4(%arg0: i32, %arg1: i32) -> (i32, i32) {
    %c0_i32 = arith.constant 0 : i32
    %c0_i32_0 = arith.constant 0 : i32
    return %c0_i32, %arg1 : i32, i32
  }
  func.func @transform_5(%arg0: i32, %arg1: i32) -> (i32, i32) {
    %c0_i32 = arith.constant 0 : i32
    return %arg0, %arg1 : i32, i32
  }
}

</mosaic_0001>

<bundles_post_ra>
// kernel: linear_combine.1
= control target key start
LH: loop header
LB: loop body
LE: loop exit
PB: predicated region body
PF: predicated region fallthrough
CT: control target
= control target key end

     0   :  { %v200_v1 = vmov 0.0   ;;  %vm201_vm0 = vmmov 0   ;;  %vm34_vm1 = vcmask 130048   ;;  %s260_s0 = inlined_call_operand.vmem [shape: bf16[8,16], index: 0, kind: input, shape index: {}]   ;;  %s261_s1 = inlined_call_operand.vmem [shape: bf16[8,16], index: 1, kind: input, shape index: {}]   ;;  %s262_s2 = inlined_call_operand.vmem [shape: bf16[16,128], index: 2, kind: input, shape index: {}]   ;;  %s263_s3 = inlined_call_operand.vmem [shape: bf16[16,128], index: 3, kind: input, shape index: {}]   ;;  %s264_s4 = inlined_call_operand.vmem [shape: f32[1,128], index: 4, kind: input, shape index: {}]   ;;  %s265_s5 = inlined_call_operand.hbm [shape: f32[8,128], index: 5, kind: output, shape index: {}]  }
   0x1   :  { %v174_v0 = vld [vmem:[%s263_s3] sm:$0xff]   ;;  %159 = vmatprep.subr.bf16.mxu0 %v200_v1  ;;  %165 = vmatprep.subr.bf16.mxu1 %v200_v1 }
   0x2   :  { %v175_v2 = vld [vmem:[%s262_s2] sm:$0xff]   ;;  %160 = vmatpush3.bf16.msra.mxu0 %v174_v0  ;;  %161 = vmatprep.mubr.msk.bf16.mxu0 %vm201_vm0, %v200_v1 }
   0x3   :  { %v25_v3 = vld [vmem:[%s261_s1] sm:$0xf]  ;;  %166 = vmatpush3.bf16.msra.mxu1 %v175_v2  ;;  %167 = vmatprep.mubr.msk.bf16.mxu1 %vm201_vm0, %v200_v1 }
   0x4   :  { %v22_v4 = vld [vmem:[%s260_s0] sm:$0xf] }
   0x5   :  { %10 = vsyncpa [#allocation3], 0  ;;  %162 = vmatmul.mubr.msk.bf16.vlgmr.msra.gmra.mrb[0].mxu0 %vm34_vm1, %v25_v3  ;;  %v154_v8 = vld [vmem:[%s264_s4] ss:$0 sm:$0xff]  ;;  %s202_s26 = smov [#allocation2]  }
   0x6   :  { %168 = vmatmul.mubr.msk.bf16.vlgmr.msra.gmra.mrb[0].mxu1 %vm34_vm1, %v22_v4  ;;  %s142_s27 = sshll.u32 %s202_s26, 4  ;;  %s143_s27 = int_to_ptr.vmem [resolvable:$true] %s142_s27 }
   0x7   :  { %s176_s0 = scalar_lea.vmem %s143_s27, 128  ;;  %p181_p1 = scmp.lt.s32.totalorder %s143_s27, %s143_s27 }
   0x8   :  { %p177_p0 = scmp.ne.s32.totalorder %s143_s27, %s176_s0  ;;  %p182_p2 = scmp.lt.s32.totalorder %s176_s0, %s176_s0 }
   0xa   :  { %p183_p3 = por %p182_p2, %p181_p1 }
   0xc   :  { %p184_p4 = pnand %p183_p3, %p177_p0 }
  0xd8   :  { %v72_v5 = vpop.f32.mrb[0].mxu0 }
  0xd9   :  { %v121_v6 = vpop.f32.mrb[0].mxu1  ;;  %v163_v7 = vpop.f32.mrb[1].mxu0 }
  0xda   :  { %v122_v9 = vadd.f32 %v121_v6, %v72_v5  ;;  %v169_v10 = vpop.f32.mrb[1].mxu1  ;;  %v75_v11 = vpop.f32.mrb[2].mxu0 }
  0xdb   :  { %v124_v12 = vpop.f32.mrb[2].mxu1  ;;  %v164_v13 = vpop.f32.mrb[3].mxu0 }
  0xdc   :  { %v170_v14 = vpop.f32.mrb[3].mxu1  ;;  %v134_v15 = vadd.f32 %v154_v8, %v122_v9 }
  0xde   :  { %135 = vst [vmem:[#allocation2] sm:$0xff] %v134_v15 }
  0xdf   :  { %187 = shalt.err (!%p184_p4)
}
  0xe0   :  { %s188_s28 = scalar_lea.hbm %s265_s5, 128 }
  0xe1   :  { %p189_p5 = scmp.ne.s32.totalorder %s265_s5, %s188_s28  ;;  %p192_p6 = scmp.lt.u32.totalorder %s188_s28, %s265_s5 }
  0xe3   :  { %p194_p7 = pnand %p192_p6, %p189_p5 }
  0xe5   :  { %197 = shalt.err (!%p194_p7)
}
  0xe6   :  { %145 = dma.vmem_to_hbm [thread:$0]  %s143_s27, 128, %s265_s5, [#allocation3]  }
  0xe7   :  { %198 = dma.done.wait [#allocation3], 128  }
  0xe8   :  { %199 = vsyncadd [#allocation3], 4294967168 }
  0xe9   :  { %149 = vsyncpa [#allocation3], 1 }

</bundles_post_ra>
